<compile_context>
chip_gen: v7x
topology: tpu7x:2x2x1
jax: 0.10.0
libtpu: 0.0.40
codegen_flags: <defaults>
</compile_context>

<pallas_src>
import jax
import jax.numpy as jnp
from jax.experimental import pallas as pl
from jax.experimental.pallas import tpu as pltpu


_LANE_W = 512        # lanes per slab row (large multiple of 128 -> unmasked wide vst)
_MAX_TILE_R = 1024   # max rows per block: 1024 x 512 x 4B = 2 MiB per array per step


def _round_up(x: int, m: int) -> int:
    return ((x + m - 1) // m) * m


def _cdiv(a: int, b: int) -> int:
    return (a + b - 1) // b


def _slab_geometry(total: int, lane_w: int = _LANE_W, max_tile_r: int = _MAX_TILE_R):
    """Pick a lane-dense (rows, lane_w) slab and a row-tile size.

    rows is a multiple of tile_r, tile_r a multiple of 8 (full sublanes),
    and blocks are kept as large as possible (<= ~2 MiB f32) so the grid has
    few, large steps and padding stays tiny (< n_steps * 8 rows).
    """
    rows_raw = _cdiv(total, lane_w)
    rows8 = _round_up(max(rows_raw, 1), 8)
    n_steps = _cdiv(rows8, max_tile_r)
    tile_r = min(max_tile_r, _round_up(_cdiv(rows8, n_steps), 8))
    rows = _round_up(rows8, tile_r)
    return rows, tile_r


def _to_slab(x_flat: jax.Array, rows: int, lane_w: int) -> jax.Array:
    total = x_flat.shape[0]
    padded = rows * lane_w
    if padded != total:
        x_flat = jnp.pad(x_flat, (0, padded - total))
    return x_flat.reshape(rows, lane_w)


def _resample_frames_linear(amp_2d: jax.Array, n_samples: int) -> jax.Array:
    """Linear frame-rate -> sample-rate interpolation (wrapper glue, tiny array).

    Matches F.interpolate(mode='linear', align_corners=False) half-pixel
    semantics along the frame axis.  amp_2d: [B, frames] -> [B, n_samples].
    """
    # TODO(synk): util.resample_frames' exact interpolation mode (e.g. hann
    # window / align_corners) may differ; linear half-pixel is assumed here.
    frames = amp_2d.shape[1]
    amp_f32 = amp_2d.astype(jnp.float32)
    if frames == n_samples:
        return amp_f32
    scale = frames / n_samples
    pos = (jnp.arange(n_samples, dtype=jnp.float32) + 0.5) * scale - 0.5
    pos = jnp.clip(pos, 0.0, float(frames - 1))
    lo = jnp.floor(pos).astype(jnp.int32)
    hi = jnp.minimum(lo + 1, frames - 1)
    w = pos - lo.astype(jnp.float32)
    return amp_f32[:, lo] * (1.0 - w) + amp_f32[:, hi] * w


# ------------------------------- kernels ------------------------------------


def _vca_mul_kernel(sig_ref, amp_ref, out_ref):
    # Elementwise gain on a full (tile_r, 512) lane-dense block.
    out_ref[...] = (sig_ref[...] * amp_ref[...]).astype(out_ref.dtype)


def _vca_scalar_kernel(amp_ref, sig_ref, out_ref):
    # amp_ref is a (1, 1) float32 scalar living in SMEM -> no broadcast HBM array.
    out_ref[...] = (sig_ref[...] * amp_ref[0, 0]).astype(out_ref.dtype)


# ---------------------------- pallas wrappers --------------------------------


_COMPILER_PARAMS = pltpu.CompilerParams(
    dimension_semantics=("parallel",),
    vmem_limit_bytes=32 * 1024 * 1024,
)


def _vca_mul_slab(sig_slab: jax.Array, amp_slab: jax.Array, tile_r: int) -> jax.Array:
    rows, lane_w = sig_slab.shape
    blk = pl.BlockSpec((tile_r, lane_w), lambda i: (i, 0))
    return pl.pallas_call(
        _vca_mul_kernel,
        out_shape=jax.ShapeDtypeStruct(sig_slab.shape, sig_slab.dtype),
        grid_spec=pltpu.PrefetchScalarGridSpec(
            num_scalar_prefetch=0,
            grid=(rows // tile_r,),
            in_specs=[blk, blk],
            out_specs=blk,
        ),
        compiler_params=_COMPILER_PARAMS,
    )(sig_slab, amp_slab)


def _vca_scalar_slab(sig_slab: jax.Array, amp_scalar: jax.Array, tile_r: int) -> jax.Array:
    rows, lane_w = sig_slab.shape
    blk = pl.BlockSpec((tile_r, lane_w), lambda i: (i, 0))
    amp_smem = jnp.asarray(amp_scalar, dtype=jnp.float32).reshape(1, 1)
    return pl.pallas_call(
        _vca_scalar_kernel,
        out_shape=jax.ShapeDtypeStruct(sig_slab.shape, sig_slab.dtype),
        grid_spec=pltpu.PrefetchScalarGridSpec(
            num_scalar_prefetch=0,
            grid=(rows // tile_r,),
            in_specs=[
                pl.BlockSpec(memory_space=pltpu.MemorySpace.SMEM),  # scalar gain
                blk,
            ],
            out_specs=blk,
        ),
        compiler_params=_COMPILER_PARAMS,
    )(amp_smem, sig_slab)


def vca_forward(signal: jax.Array, amp: jax.Array) -> jax.Array:
    """JAX/Pallas equivalent of VCA.forward(signal, amp).

    signal: [B, n_samples]
    amp:    [B, frames, 1] (frame-rate gain)  or  scalar / 0-d / 1-d gain
    """
    B, n_samples = signal.shape
    total = B * n_samples
    rows, tile_r = _slab_geometry(total)
    sig_slab = _to_slab(signal.reshape(-1), rows, _LANE_W)

    if amp.ndim > 1:
        amp_2d = amp[:, :, 0]
        if amp_2d.shape[1] != n_samples:
            # Frame-rate control signal: upsample to sample rate (cheap plain-JAX
            # glue on the small frame array), then run the bandwidth-bound kernel.
            amp_2d = _resample_frames_linear(amp_2d, n_samples)
        amp_2d = amp_2d.astype(signal.dtype)
        amp_slab = _to_slab(amp_2d.reshape(-1), rows, _LANE_W)
        out_slab = _vca_mul_slab(sig_slab, amp_slab, tile_r)
    elif amp.size == 1:
        # Scalar gain: feed via SMEM, no [B, N] broadcast array in HBM.
        out_slab = _vca_scalar_slab(sig_slab, amp, tile_r)
    else:
        # 1-D gain broadcastable against [B, N] (matches torch `amp * signal`).
        amp_2d = jnp.broadcast_to(amp.astype(signal.dtype), signal.shape)
        amp_slab = _to_slab(amp_2d.reshape(-1), rows, _LANE_W)
        out_slab = _vca_mul_slab(sig_slab, amp_slab, tile_r)

    return out_slab.reshape(-1)[:total].reshape(B, n_samples)


if __name__ == "__main__":
    key = jax.random.PRNGKey(0)
    k_sig, k_amp, k_sig2, k_amp2 = jax.random.split(key, 4)

    # Case 1: sample-rate amp [B, N, 1]; total = 4096 fills the slab exactly
    # (no padding path). Values consistent with param_desc: signal in (-1, 1),
    # amp in (0, 10) (already "sigmoid-scaled").
    B, N = 2, 2048
    signal = jax.random.uniform(k_sig, (B, N), dtype=jnp.float32, minval=-1.0, maxval=1.0)
    amp = jax.random.uniform(k_amp, (B, N, 1), dtype=jnp.float32, minval=0.0, maxval=10.0)
    out = jax.block_until_ready(vca_forward(signal, amp))
    ref = amp[:, :, 0] * signal
    assert out.shape == (B, N)
    assert jnp.allclose(out, ref, rtol=1e-6, atol=1e-6)

    # Case 2: scalar amp (amp.ndim == 0) -> SMEM path, no broadcast HBM read.
    amp_scalar = jnp.asarray(3.5, dtype=jnp.float32)
    out2 = jax.block_until_ready(vca_forward(signal, amp_scalar))
    assert jnp.allclose(out2, amp_scalar * signal, rtol=1e-6, atol=1e-6)

    # Case 3: ragged sample count (exercises the padded-slab path).
    Nr = 1000
    signal_r = jax.random.uniform(k_sig2, (B, Nr), dtype=jnp.float32, minval=-1.0, maxval=1.0)
    amp_r = jax.random.uniform(k_amp, (B, Nr, 1), dtype=jnp.float32, minval=0.0, maxval=10.0)
    out3 = jax.block_until_ready(vca_forward(signal_r, amp_r))
    assert out3.shape == (B, Nr)
    assert jnp.allclose(out3, amp_r[:, :, 0] * signal_r, rtol=1e-6, atol=1e-6)

    # Case 4: bf16 pass-through (halves HBM bytes on this mem-bound op).
    sig_bf = signal.astype(jnp.bfloat16)
    amp_bf = amp.astype(jnp.bfloat16)
    out4 = jax.block_until_ready(vca_forward(sig_bf, amp_bf))
    assert out4.dtype == jnp.bfloat16
    ref4 = amp_bf[:, :, 0].astype(jnp.float32) * sig_bf.astype(jnp.float32)
    assert jnp.allclose(out4.astype(jnp.float32), ref4, rtol=2e-2, atol=2e-2)

    # Case 5: frame-rate amp [B, frames, 1] with frames != n_samples
    # (exercises the resample path: linear upsample + kernel multiply).
    F = 128
    amp_frames = jax.random.uniform(k_amp2, (B, F, 1), dtype=jnp.float32, minval=0.0, maxval=10.0)
    out5 = jax.block_until_ready(vca_forward(signal, amp_frames))
    ref5 = _resample_frames_linear(amp_frames[:, :, 0], N) * signal
    assert out5.shape == (B, N)
    assert jnp.allclose(out5, ref5, rtol=1e-6, atol=1e-6)

    print("KERNEL_OK")
</pallas_src>

<mosaic_0001>
module attributes {stable_mosaic.version = 11 : i64} {
  func.func @_vca_mul_kernel(%arg0: i32, %arg1: memref<8x512xf32, #tpu.memory_space<vmem>>, %arg2: memref<8x512xf32, #tpu.memory_space<vmem>>, %arg3: memref<8x512xf32, #tpu.memory_space<vmem>>) attributes {dimension_semantics = [#tpu.dimension_semantics<parallel>], iteration_bounds = array<i64: 1>, scalar_prefetch = 0 : i64, scratch_operands = 0 : i64, tpu.core_type = #tpu.core_type<tc>, window_params = [{transform_indices = @transform_0, window_bounds = array<i64: 8, 512>}, {transform_indices = @transform_1, window_bounds = array<i64: 8, 512>}, {transform_indices = @transform_2, window_bounds = array<i64: 8, 512>}]} {
    %c0 = arith.constant 0 : index
    %c0_0 = arith.constant 0 : index
    %0 = vector.load %arg1[%c0, %c0_0] : memref<8x512xf32, #tpu.memory_space<vmem>>, vector<8x512xf32>
    %c0_1 = arith.constant 0 : index
    %c0_2 = arith.constant 0 : index
    %1 = vector.load %arg2[%c0_1, %c0_2] : memref<8x512xf32, #tpu.memory_space<vmem>>, vector<8x512xf32>
    %2 = arith.mulf %0, %1 : vector<8x512xf32>
    %c0_3 = arith.constant 0 : index
    %c0_4 = arith.constant 0 : index
    %3 = vector.load %arg3[%c0_3, %c0_4] : memref<8x512xf32, #tpu.memory_space<vmem>>, vector<8x512xf32>
    tpu.vector_store %arg3[%c0_3, %c0_4], %2 {strides = array<i32>} : memref<8x512xf32, #tpu.memory_space<vmem>>, vector<8x512xf32>,
    return
  }
  func.func @transform_0(%arg0: i32) -> (i32, i32) {
    %c0_i32 = arith.constant 0 : i32
    %c0_i32_0 = arith.constant 0 : i32
    return %arg0, %c0_i32 : i32, i32
  }
  func.func @transform_1(%arg0: i32) -> (i32, i32) {
    %c0_i32 = arith.constant 0 : i32
    %c0_i32_0 = arith.constant 0 : i32
    return %arg0, %c0_i32 : i32, i32
  }
  func.func @transform_2(%arg0: i32) -> (i32, i32) {
    %c0_i32 = arith.constant 0 : i32
    %c0_i32_0 = arith.constant 0 : i32
    return %arg0, %c0_i32 : i32, i32
  }
}

</mosaic_0001>

<bundles_post_ra>
// kernel: tpu_custom_call.1
= control target key start
LH: loop header
LB: loop body
LE: loop exit
PB: predicated region body
PF: predicated region fallthrough
CT: control target
= control target key end

     0   :  { %7 = vsyncpa [#allocation3], 0  ;;  %s197_s0 = inlined_call_operand.hbm [shape: f32[8,512], index: 0, kind: input, shape index: {}]   ;;  %s198_s1 = inlined_call_operand.hbm [shape: f32[8,512], index: 1, kind: input, shape index: {}]   ;;  %s199_s2 = inlined_call_operand.hbm [shape: f32[8,512], index: 2, kind: output, shape index: {}]  }
   0x1   :  { %8 = vsyncpa [#allocation6], 0 }
   0x2   :  { %9 = vsyncpa [#allocation4], 0  ;;  %s143_s9 = smov [#allocation2]   ;;  %s144_s11 = smov [#allocation5]  }
   0x3   :  { %s16_s10 = sshll.u32 %s143_s9, 4  ;;  %s26_s12 = sshll.u32 %s144_s11, 4  ;;  %s17_s10 = int_to_ptr.vmem [resolvable:$true] %s16_s10  ;;  %s27_s12 = int_to_ptr.vmem [resolvable:$true] %s26_s12 }
   0x4   :  { %s71_s15 = scalar_lea.hbm %s197_s0, 512 }
   0x5   :  { %p72_p0 = scmp.ne.s32.totalorder %s197_s0, %s71_s15  ;;  %p75_p1 = scmp.lt.u32.totalorder %s71_s15, %s197_s0 }
   0x7   :  { %p77_p2 = pnand %p75_p1, %p72_p0 }
   0x9   :  { %80 = shalt.err (!%p77_p2)
}
   0xa   :  { %s81_s20 = scalar_lea.vmem %s17_s10, 512  ;;  %p86_p4 = scmp.lt.s32.totalorder %s17_s10, %s17_s10 }
   0xb   :  { %p82_p3 = scmp.ne.s32.totalorder %s17_s10, %s81_s20  ;;  %p87_p5 = scmp.lt.s32.totalorder %s81_s20, %s81_s20 }
   0xd   :  { %p88_p6 = por %p87_p5, %p86_p4 }
   0xf   :  { %p89_p7 = pnand %p88_p6, %p82_p3 }
  0x11   :  { %92 = shalt.err (!%p89_p7)
}
  0x12   :  { %19 = dma.hbm_to_vmem [thread:$0]  %s197_s0, 512, %s17_s10, [#allocation3]  }
  0x13   :  { %s93_s25 = scalar_lea.hbm %s198_s1, 512 }
  0x14   :  { %p94_p8 = scmp.ne.s32.totalorder %s198_s1, %s93_s25  ;;  %p97_p9 = scmp.lt.u32.totalorder %s93_s25, %s198_s1 }
  0x16   :  { %p99_p10 = pnand %p97_p9, %p94_p8 }
  0x18   :  { %102 = shalt.err (!%p99_p10)
}
  0x19   :  { %s103_s30 = scalar_lea.vmem %s27_s12, 512  ;;  %p108_p12 = scmp.lt.s32.totalorder %s27_s12, %s27_s12 }
  0x1a   :  { %p104_p11 = scmp.ne.s32.totalorder %s27_s12, %s103_s30  ;;  %p109_p13 = scmp.lt.s32.totalorder %s103_s30, %s103_s30 }
  0x1c   :  { %p110_p0 = por %p109_p13, %p108_p12 }
  0x1e   :  { %p111_p1 = pnand %p110_p0, %p104_p11 }
  0x20   :  { %114 = shalt.err (!%p111_p1)
}
  0x21   :  { %29 = dma.hbm_to_vmem [thread:$0]  %s198_s1, 512, %s27_s12, [#allocation6]  }
  0x22   :  { %137 = dma.done.wait [#allocation3], 512  }
  0x23   :  { %138 = vsyncadd [#allocation3], 4294966784 }
  0x24   :  { %139 = dma.done.wait [#allocation6], 512  }
  0x25   :  { %140 = vsyncadd [#allocation6], 4294966784  ;;  %v36_v0 = vld [vmem:[#allocation2] sm:$0xff]  ;;  %v37_v2 = vld [vmem:[#allocation2 + $0x8] sm:$0xff]  ;;  %s145_s4 = smov [#allocation7]  }
  0x26   :  { %v40_v1 = vld [vmem:[#allocation5] sm:$0xff]  ;;  %s58_s5 = sshll.u32 %s145_s4, 4  ;;  %v41_v4 = vld [vmem:[#allocation5 + $0x8] sm:$0xff]  ;;  %v38_v5 = vld [vmem:[#allocation2 + $0x10] sm:$0xff]  ;;  %s59_s5 = int_to_ptr.vmem [resolvable:$true] %s58_s5 }
  0x27   :  { %v44_v3 = vmul.f32 %v40_v1, %v36_v0  ;;  %v42_v6 = vld [vmem:[#allocation5 + $0x10] sm:$0xff]  ;;  %v45_v7 = vmul.f32 %v41_v4, %v37_v2  ;;  %v39_v9 = vld [vmem:[#allocation2 + $0x18] sm:$0xff]  ;;  %s115_s1 = scalar_lea.vmem %s59_s5, 512  ;;  %p120_p3 = scmp.lt.s32.totalorder %s59_s5, %s59_s5 }
  0x28   :  { %v46_v8 = vmul.f32 %v42_v6, %v38_v5  ;;  %v43_v10 = vld [vmem:[#allocation5 + $0x18] sm:$0xff]  ;;  %p116_p2 = scmp.ne.s32.totalorder %s59_s5, %s115_s1  ;;  %p121_p4 = scmp.lt.s32.totalorder %s115_s1, %s115_s1 }
  0x29   :  { %48 = vst [vmem:[#allocation7] sm:$0xff] %v44_v3  ;;  %v47_v11 = vmul.f32 %v43_v10, %v39_v9  ;;  %49 = vst [vmem:[#allocation7 + $0x8] sm:$0xff] %v45_v7 }
  0x2a   :  { %50 = vst [vmem:[#allocation7 + $0x10] sm:$0xff] %v46_v8  ;;  %p122_p5 = por %p121_p4, %p120_p3 }
  0x2b   :  { %51 = vst [vmem:[#allocation7 + $0x18] sm:$0xff] %v47_v11 }
  0x2c   :  { %p123_p6 = pnand %p122_p5, %p116_p2 }
  0x2e   :  { %126 = shalt.err (!%p123_p6)
}
  0x2f   :  { %s127_s8 = scalar_lea.hbm %s199_s2, 512 }
  0x30   :  { %p128_p7 = scmp.ne.s32.totalorder %s199_s2, %s127_s8  ;;  %p131_p8 = scmp.lt.u32.totalorder %s127_s8, %s199_s2 }
  0x32   :  { %p133_p9 = pnand %p131_p8, %p128_p7 }
  0x34   :  { %136 = shalt.err (!%p133_p9)
}
  0x35   :  { %61 = dma.vmem_to_hbm [thread:$0]  %s59_s5, 512, %s199_s2, [#allocation4]  }
  0x36   :  { %141 = dma.done.wait [#allocation4], 512  }
  0x37   :  { %142 = vsyncadd [#allocation4], 4294966784 }
  0x38   :  { %65 = vsyncpa [#allocation3], 1 }
  0x39   :  { %66 = vsyncpa [#allocation6], 1 }
  0x3a   :  { %67 = vsyncpa [#allocation4], 1 }

</bundles_post_ra>
